<compile_context>
chip_gen: v7x
topology: tpu7x:2x2x1
jax: 0.10.0
libtpu: 0.0.40
codegen_flags: <defaults>
</compile_context>

<pallas_src>
import math

import numpy as np
import jax
import jax.numpy as jnp
from jax import lax
from jax.experimental import pallas as pl
from jax.experimental.pallas import tpu as pltpu

# ---------------- configuration (small, consistent with the module) ----------
B = 2            # graphs per batch
N = 8            # nodes per graph
D = 16           # input_dim (= token_dim)
T = 10           # token_num
H = 16           # hid_dim
C = 2            # num_classes
INNER_PRUNE = 0.3
CROSS_PRUNE = 0.1

# sigmoid(x) >= p  <=>  x >= log(p / (1 - p))  -> compare raw dot products.
INNER_LOGIT = math.log(INNER_PRUNE / (1.0 - INNER_PRUNE))
CROSS_LOGIT = math.log(CROSS_PRUNE / (1.0 - CROSS_PRUNE))

LANES = 128      # lane-dense output width
OUT_ROWS = 8     # sublane-dense output height
S_REAL = T + B * N          # 26 prompted rows: [tokens ; nodes_g0 ; nodes_g1]
S_PAD = 32                  # sublane-aligned stacked row count (pad rows inert)


def _build_pool_mat():
    """(8, S_PAD): row g mean-pools graph g's prompted node set (its N original
    nodes + the shared T prompt tokens); rows B..7 and pad columns are zero."""
    pool = np.zeros((OUT_ROWS, S_PAD), np.float32)
    inv = 1.0 / float(T + N)
    for g in range(B):
        pool[g, :T] = inv                                # shared prompt tokens
        pool[g, T + g * N:T + (g + 1) * N] = inv         # graph-g original nodes
    return jnp.asarray(pool)


def _build_thresholds():
    """(S_PAD, 1): token-target rows use the inner-prune logit, node-target rows
    use the cross-prune logit (pad rows are inert — any value works)."""
    thr = np.full((S_PAD, 1), CROSS_LOGIT, np.float32)
    thr[:T, 0] = INNER_LOGIT
    return jnp.asarray(thr)


POOL_MAT = _build_pool_mat()
THRESH_COL = _build_thresholds()


# ---------------- fused kernel: HeavyPrompt + dense GCN + pool + answering ---
def heavy_prompt_fused_kernel(tokens_ref, x_ref, slab_ref, thr_ref,
                              w_gnn_ref, b_gnn_ref, pool_ref,
                              w_ans_ref, b_ans_ref, out_ref):
    tokens = tokens_ref[...]                               # (T, D)
    x = x_ref[...]                                         # (S_PAD, D) stacked features

    # --- ONE stacked contraction: [tokens ; nodes_g0 ; nodes_g1 ; pad] @ tokens^T
    dots = lax.dot_general(x, tokens, (((1,), (1,)), ((), ())),
                           preferred_element_type=jnp.float32)   # (S_PAD, T)
    # per-row-block threshold (inner for token rows, cross for node rows)
    adj_tok = (dots >= thr_ref[...]).astype(jnp.float32)         # (S_PAD, T)

    # --- block adjacency: lane-concat token-source block with node-source slab
    # column order matches the row order of x: cols 0..T-1 token sources,
    # cols T..T+B*N-1 node sources (block-diag gadj), remaining cols zero pad.
    a_block = jnp.concatenate([adj_tok, slab_ref[...]], axis=1)  # (S_PAD, S_PAD)

    # --- ONE fused message-aggregation matmul (inner + cross + original edges)
    msg = jnp.dot(a_block, x, preferred_element_type=jnp.float32)   # (S_PAD, D)

    # --- stand-in dense GCN layer (sum-aggregate already in msg) --------------
    h = jnp.maximum(
        jnp.dot(msg, w_gnn_ref[...], preferred_element_type=jnp.float32)
        + b_gnn_ref[...], 0.0)                                       # (S_PAD, H)

    # --- global mean pool per graph as a matmul (rows B..7 zero padding) ------
    emb = jnp.dot(pool_ref[...], h, preferred_element_type=jnp.float32)  # (8, H)

    # --- fused answering head: lane-padded Linear(H -> 128) + row softmax -----
    # padded lanes carry weight 0 and bias -1e30 so their softmax mass is 0
    logits = (jnp.dot(emb, w_ans_ref[...], preferred_element_type=jnp.float32)
              + b_ans_ref[...])                                      # (8, 128)
    m = jnp.max(logits, axis=1, keepdims=True)
    e = jnp.exp(logits - m)
    inv = pl.reciprocal(jnp.sum(e, axis=1, keepdims=True), approx=False)  # EUP
    out_ref[...] = e * inv                                 # lane-dense unmasked store


# ---------------- full forward (single pallas_call, no grid) ------------------
@jax.jit
def front_and_head_forward(node_x, node_adj, params):
    tokens = params["tokens"]

    # pre-stack prompted features in XLA (no in-kernel concatenate / slicing):
    # rows 0..T-1 tokens, T..T+B*N-1 graph nodes, rest zero padding.
    x_stack = jnp.zeros((S_PAD, D), jnp.float32)
    x_stack = x_stack.at[:T].set(tokens)
    x_stack = x_stack.at[T:T + B * N].set(node_x.reshape(B * N, D))

    # block-diagonal original-edge slab: slab[T+g*N+i, g*N+j] = A_g[i, j]
    # (token-target rows and pad rows/cols are zero). Shape (S_PAD, S_PAD - T)
    # so the kernel only lane-concats two tiles to form the full block adjacency.
    slab = jnp.zeros((S_PAD, S_PAD - T), jnp.float32)
    for g in range(B):
        slab = slab.at[T + g * N:T + (g + 1) * N,
                       g * N:(g + 1) * N].set(node_adj[g])

    vmem = pltpu.MemorySpace.VMEM
    probs_padded = pl.pallas_call(
        heavy_prompt_fused_kernel,
        out_shape=jax.ShapeDtypeStruct((OUT_ROWS, LANES), jnp.float32),
        in_specs=[pl.BlockSpec(memory_space=vmem) for _ in range(9)],
        out_specs=pl.BlockSpec(memory_space=vmem),
        cost_estimate=pl.CostEstimate(flops=101_000, transcendentals=1024,
                                      bytes_accessed=21_000),
    )(tokens, x_stack, slab, THRESH_COL,
      params["w_gnn"], params["b_gnn"], POOL_MAT,
      params["w_ans_p"], params["b_ans_p"])
    return probs_padded[:B, :C]


# ---------------- deterministic parameter init --------------------------------
def init_params(key):
    k_tok, k_wg, k_bg, k_wa, k_ba = jax.random.split(key, 5)

    # LightPrompt tokens: kaiming_uniform_, leaky_relu a=0.01, fan_in=D
    a = 0.01
    gain = math.sqrt(2.0 / (1.0 + a * a))
    bound_tok = gain * math.sqrt(3.0 / D)
    tokens = jax.random.uniform(k_tok, (T, D), jnp.float32, -bound_tok, bound_tok)

    # GNN (stand-in for external callable): Linear(D -> H), PyTorch-default init
    bg = 1.0 / math.sqrt(D)
    w_gnn = jax.random.uniform(k_wg, (D, H), jnp.float32, -bg, bg)
    b_gnn = jax.random.uniform(k_bg, (1, H), jnp.float32, -bg, bg)

    # answering: Linear(H -> C), lane-padded to 128 for an unmasked output store
    ba = 1.0 / math.sqrt(H)
    w_ans = jax.random.uniform(k_wa, (H, C), jnp.float32, -ba, ba)
    b_ans = jax.random.uniform(k_ba, (1, C), jnp.float32, -ba, ba)
    w_ans_p = jnp.zeros((H, LANES), jnp.float32).at[:, :C].set(w_ans)
    b_ans_p = jnp.full((1, LANES), -1e30, jnp.float32).at[:, :C].set(b_ans)

    return dict(tokens=tokens, w_gnn=w_gnn, b_gnn=b_gnn,
                w_ans_p=w_ans_p, b_ans_p=b_ans_p)


if __name__ == "__main__":
    key = jax.random.PRNGKey(0)
    k_params, k_x, k_adj = jax.random.split(key, 3)

    params = init_params(k_params)

    # dense graph batch: node features + binary adjacency (A[i,j]=1 iff edge j->i)
    node_x = jax.random.normal(k_x, (B, N, D), jnp.float32)
    raw = jax.random.uniform(k_adj, (B, N, N), jnp.float32)
    adj = (raw < 0.35).astype(jnp.float32)
    node_adj = jnp.maximum(adj, jnp.swapaxes(adj, 1, 2))   # undirected edges

    # TODO(synk): the reference `gnn` is an arbitrary external nn.Module passed
    # to forward(); here it is fixed to a 1-layer dense GCN + global mean pool.
    probs = front_and_head_forward(node_x, node_adj, params)
    probs = jax.block_until_ready(probs)

    assert probs.shape == (B, C)
    assert bool(jnp.all(jnp.isfinite(probs)))
    assert bool(jnp.allclose(jnp.sum(probs, axis=1), 1.0, atol=1e-5))  # softmax rows
    print("KERNEL_OK")
</pallas_src>

<mosaic_0001>
module attributes {stable_mosaic.version = 11 : i64} {
  func.func @heavy_prompt_fused_kernel(%arg0: memref<10x16xf32, #tpu.memory_space<vmem>>, %arg1: memref<32x16xf32, #tpu.memory_space<vmem>>, %arg2: memref<32x22xf32, #tpu.memory_space<vmem>>, %arg3: memref<32x1xf32, #tpu.memory_space<vmem>>, %arg4: memref<16x16xf32, #tpu.memory_space<vmem>>, %arg5: memref<1x16xf32, #tpu.memory_space<vmem>>, %arg6: memref<8x32xf32, #tpu.memory_space<vmem>>, %arg7: memref<16x128xf32, #tpu.memory_space<vmem>>, %arg8: memref<1x128xf32, #tpu.memory_space<vmem>>, %arg9: memref<8x128xf32, #tpu.memory_space<vmem>>) attributes {dimension_semantics = [], scalar_prefetch = 0 : i64, scratch_operands = 0 : i64, tpu.core_type = #tpu.core_type<tc>} {
    %c0 = arith.constant 0 : index
    %c0_0 = arith.constant 0 : index
    %0 = vector.load %arg0[%c0, %c0_0] : memref<10x16xf32, #tpu.memory_space<vmem>>, vector<10x16xf32>
    %c0_1 = arith.constant 0 : index
    %c0_2 = arith.constant 0 : index
    %1 = vector.load %arg1[%c0_1, %c0_2] : memref<32x16xf32, #tpu.memory_space<vmem>>, vector<32x16xf32>
    %cst = arith.constant dense<0.000000e+00> : vector<32x10xf32>
    %2 = tpu.matmul %1, %0, %cst {dimension_numbers = #tpu.dot_dimension_numbers<[1], [1], [0], [0], [0, 0, 1, 0], [], []>} : vector<32x16xf32>, vector<10x16xf32>, vector<32x10xf32> -> vector<32x10xf32>
    %c0_3 = arith.constant 0 : index
    %c0_4 = arith.constant 0 : index
    %3 = vector.load %arg3[%c0_3, %c0_4] : memref<32x1xf32, #tpu.memory_space<vmem>>, vector<32x1xf32>
    %4 = vector.broadcast %3 : vector<32x1xf32> to vector<32x10xf32>
    %5 = arith.cmpf oge, %2, %4 : vector<32x10xf32>
    %6 = arith.extui %5 : vector<32x10xi1> to vector<32x10xi32>
    %7 = arith.sitofp %6 : vector<32x10xi32> to vector<32x10xf32>
    %c0_5 = arith.constant 0 : index
    %c0_6 = arith.constant 0 : index
    %8 = vector.load %arg2[%c0_5, %c0_6] : memref<32x22xf32, #tpu.memory_space<vmem>>, vector<32x22xf32>
    %9 = tpu.concatenate %7, %8 in 1 : vector<32x10xf32>, vector<32x22xf32> -> vector<32x32xf32>
    %cst_7 = arith.constant dense<0.000000e+00> : vector<32x16xf32>
    %10 = tpu.matmul %9, %1, %cst_7 {dimension_numbers = #tpu.dot_dimension_numbers<[1], [0], [0], [1], [0, 0, 1, 1], [], []>} : vector<32x32xf32>, vector<32x16xf32>, vector<32x16xf32> -> vector<32x16xf32>
    %c0_8 = arith.constant 0 : index
    %c0_9 = arith.constant 0 : index
    %11 = vector.load %arg4[%c0_8, %c0_9] : memref<16x16xf32, #tpu.memory_space<vmem>>, vector<16x16xf32>
    %cst_10 = arith.constant dense<0.000000e+00> : vector<32x16xf32>
    %12 = tpu.matmul %10, %11, %cst_10 {dimension_numbers = #tpu.dot_dimension_numbers<[1], [0], [0], [1], [0, 0, 1, 1], [], []>} : vector<32x16xf32>, vector<16x16xf32>, vector<32x16xf32> -> vector<32x16xf32>
    %c0_11 = arith.constant 0 : index
    %c0_12 = arith.constant 0 : index
    %13 = vector.load %arg5[%c0_11, %c0_12] : memref<1x16xf32, #tpu.memory_space<vmem>>, vector<1x16xf32>
    %14 = vector.broadcast %13 : vector<1x16xf32> to vector<32x16xf32>
    %15 = arith.addf %12, %14 : vector<32x16xf32>
    %cst_13 = arith.constant 0.000000e+00 : f32
    %16 = vector.broadcast %cst_13 : f32 to vector<32x16xf32>
    %17 = arith.maximumf %15, %16 : vector<32x16xf32>
    %c0_14 = arith.constant 0 : index
    %c0_15 = arith.constant 0 : index
    %18 = vector.load %arg6[%c0_14, %c0_15] : memref<8x32xf32, #tpu.memory_space<vmem>>, vector<8x32xf32>
    %cst_16 = arith.constant dense<0.000000e+00> : vector<8x16xf32>
    %19 = tpu.matmul %18, %17, %cst_16 {dimension_numbers = #tpu.dot_dimension_numbers<[1], [0], [0], [1], [0, 0, 1, 1], [], []>} : vector<8x32xf32>, vector<32x16xf32>, vector<8x16xf32> -> vector<8x16xf32>
    %c0_17 = arith.constant 0 : index
    %c0_18 = arith.constant 0 : index
    %20 = vector.load %arg7[%c0_17, %c0_18] : memref<16x128xf32, #tpu.memory_space<vmem>>, vector<16x128xf32>
    %cst_19 = arith.constant dense<0.000000e+00> : vector<8x128xf32>
    %21 = tpu.matmul %19, %20, %cst_19 {dimension_numbers = #tpu.dot_dimension_numbers<[1], [0], [0], [1], [0, 0, 1, 1], [], []>} : vector<8x16xf32>, vector<16x128xf32>, vector<8x128xf32> -> vector<8x128xf32>
    %c0_20 = arith.constant 0 : index
    %c0_21 = arith.constant 0 : index
    %22 = vector.load %arg8[%c0_20, %c0_21] : memref<1x128xf32, #tpu.memory_space<vmem>>, vector<1x128xf32>
    %23 = vector.broadcast %22 : vector<1x128xf32> to vector<8x128xf32>
    %24 = arith.addf %21, %23 : vector<8x128xf32>
    %cst_22 = arith.constant dense<0xFF800000> : vector<8xf32>
    %25 = vector.multi_reduction <maximumf>, %24, %cst_22 [1] : vector<8x128xf32> to vector<8xf32>
    %26 = vector.shape_cast %25 : vector<8xf32> to vector<8x1xf32>
    %27 = vector.broadcast %26 : vector<8x1xf32> to vector<8x128xf32>
    %28 = arith.subf %24, %27 : vector<8x128xf32>
    %29 = math.exp %28 : vector<8x128xf32>
    %cst_23 = arith.constant dense<0.000000e+00> : vector<8xf32>
    %30 = vector.multi_reduction <add>, %29, %cst_23 [1] : vector<8x128xf32> to vector<8xf32>
    %31 = vector.shape_cast %30 : vector<8xf32> to vector<8x1xf32>
    %32 = tpu.reciprocal %31 : vector<8x1xf32> -> vector<8x1xf32>
    %33 = vector.broadcast %32 : vector<8x1xf32> to vector<8x128xf32>
    %34 = arith.mulf %29, %33 : vector<8x128xf32>
    %c0_24 = arith.constant 0 : index
    %c0_25 = arith.constant 0 : index
    %35 = vector.load %arg9[%c0_24, %c0_25] : memref<8x128xf32, #tpu.memory_space<vmem>>, vector<8x128xf32>
    tpu.vector_store %arg9[%c0_24, %c0_25], %34 {strides = array<i32>} : memref<8x128xf32, #tpu.memory_space<vmem>>, vector<8x128xf32>,
    return
  }
}

</mosaic_0001>

<bundles_post_ra>
// kernel: front_and_head_forward.1
= control target key start
LH: loop header
LB: loop body
LE: loop exit
PB: predicated region body
PF: predicated region fallthrough
CT: control target
= control target key end

     0   :  { %vm38_vm0 = vcmask 130048   ;;  %v721_v2 = vmov 0   ;;  %vm198_vm3 = vcmask 80896   ;;  %v723_v29 = vmov 0.0   ;;  %s864_s0 = inlined_call_operand.vmem [shape: f32[10,16], index: 0, kind: input, shape index: {}]   ;;  %s865_s1 = inlined_call_operand.vmem [shape: f32[32,16], index: 1, kind: input, shape index: {}]   ;;  %s866_s3 = inlined_call_operand.vmem [shape: f32[32,1], index: 3, kind: input, shape index: {}]   ;;  %s867_s2 = inlined_call_operand.vmem [shape: f32[32,22], index: 2, kind: input, shape index: {}]   ;;  %s868_s4 = inlined_call_operand.vmem [shape: f32[16,16], index: 4, kind: input, shape index: {}]   ;;  %s869_s5 = inlined_call_operand.vmem [shape: f32[1,16], index: 5, kind: input, shape index: {}]   ;;  %s870_s7 = inlined_call_operand.vmem [shape: f32[16,128], index: 7, kind: input, shape index: {}]   ;;  %s871_s6 = inlined_call_operand.vmem [shape: f32[8,32], index: 6, kind: input, shape index: {}]   ;;  %s872_s8 = inlined_call_operand.vmem [shape: f32[1,128], index: 8, kind: input, shape index: {}]   ;;  %s873_s9 = inlined_call_operand.vmem [shape: f32[8,128], index: 9, kind: output, shape index: {}]  }
   0x1   :  { %v32_v0 = vld [vmem:[%s864_s0] sm:$0xff]  ;;  %v33_v1 = vld [vmem:[%s864_s0 + $0x8] sm:$0x3]  ;;  %vm684_vm1 = vmpackc.low %vm38_vm0, %vm38_vm0  ;;  %715 = vset.pattern.permute.xlu0 %v721_v2  ;;  %716 = vset.pattern.permute.xlu1 %v721_v2  ;;  %vm203_vm5 = vcmask 261120   ;;  %v724_v46 = vmov 0.0|0.0   ;;  %vm725_vm8 = vmmov 0  }
   0x2   :  { %v683_v3 = vpack.c.bf16 %v33_v1, %v32_v0  ;;  %v34_v4 = vld [vmem:[%s865_s1] sm:$0xff]  ;;  %v144_v6 = vld [vmem:[%s866_s3 + $0x10] sm:$0xff]  ;;  %v143_v7 = vld [vmem:[%s866_s3 + $0x8] sm:$0xff] }
   0x3   :  { %635 = vmatprep.mubr.msk.f32.mxu0 %vm38_vm0, %v34_v4  ;;  %v142_v5 = vld [vmem:[%s866_s3] sm:$0xff]  ;;  %158 = vperm.xlu1 %716, %v144_v6   ;;  %v145_v8 = vld [vmem:[%s866_s3 + $0x18] sm:$0xff]  ;;  %v35_v9 = vld [vmem:[%s865_s1 + $0x8] sm:$0xff]  ;;  %s722_s3 = smov 10  }
   0x4   :  { %685 = vmatprep.subr.msk.bf16.mxu0 %vm684_vm1, %v683_v3  ;;  %148 = vperm.xlu0 %715, %v142_v5   ;;  %v689_v10 = vpack.c.bf16 %v35_v9, %v34_v4  ;;  %v178_v11 = vld [vmem:[%s867_s2] sm:$0xff]  ;;  %v36_v12 = vld [vmem:[%s865_s1 + $0x10] sm:$0xff]  ;;  %v179_v13 = vld [vmem:[%s867_s2 + $0x8] sm:$0xff] }
   0x5   :  { %688 = vmatpush3.bf16.xpose.msk.msra.mxu0 %vm684_vm1, %v683_v3  ;;  %v37_v14 = vld [vmem:[%s865_s1 + $0x18] sm:$0xff]  ;;  %v180_v15 = vld [vmem:[%s867_s2 + $0x10] sm:$0xff]  ;;  %v301_v18 = vld [vmem:[%s868_s4] sm:$0xff] }
   0x6   :  { %690 = vmatprep.subr.bf16.mxu1 %v689_v10  ;;  %v181_v16 = vld [vmem:[%s867_s2 + $0x18] sm:$0xff]  ;;  %v693_v17 = vpack.c.bf16 %v37_v14, %v36_v12  ;;  %v302_v19 = vld [vmem:[%s868_s4 + $0x8] sm:$0xff]  ;;  %v595_v47 = vld [vmem:[%s869_s5] ss:$0 sm:$0xff] }
   0x7   :  { %163 = vperm.xlu1 %716, %v145_v8   ;;  %692 = vmatpush3.bf16.msra.mxu1 %v689_v10  ;;  %v697_v20 = vpack.c.bf16 %v302_v19, %v301_v18  ;;  %v485_v61 = vld [vmem:[%s870_s7] sm:$0xff]  ;;  %v486_v62 = vld [vmem:[%s870_s7 + $0x8] sm:$0xff] }
   0x8   :  { %153 = vperm.xlu0 %715, %v143_v7   ;;  %694 = vmatprep.subr.bf16.mxu1 %v693_v17  ;;  %v411_v0 = vld [vmem:[%s871_s6] sm:$0xff]  ;;  %v708_v1 = vpack.c.bf16 %v486_v62, %v485_v61 }
   0x9   :  { %698 = vmatprep.subr.bf16.mxu0 %v697_v20  ;;  %v601_v4 = vld [vmem:[%s872_s8] ss:$0 sm:$0xff] }
   0xb   :  { %188 = vrot.lane.b32.xlu1 %v179_v13, %s722_s3  ;;  %696 = vmatpush3.bf16.msra.mxu1 %v693_v17 }
   0xc   :  { %636 = vmatmul.mubr.msk.f32.vlgmr.msra.gmra.mrb[0].mxu0 %vm38_vm0, %v35_v9  ;;  %186 = vrot.lane.b32.xlu0 %v178_v11, %s722_s3 }
   0xd   :  { %638 = vmatprep.mubr.msk.f32.mxu0 %vm38_vm0, %v36_v12  ;;  %700 = vmatpush3.bf16.msra.mxu0 %v697_v20 }
   0xe   :  { %701 = vmatprep.subr.bf16.mxu1 %v724_v46 }
   0xf   :  { %192 = vrot.lane.b32.xlu1 %v181_v16, %s722_s3 }
  0x10   :  { %639 = vmatmul.mubr.msk.f32.gmra.mrb[2].mxu0 %vm38_vm0, %v37_v14  ;;  %190 = vrot.lane.b32.xlu0 %v180_v15, %s722_s3 }
  0x82   :  { %v159_v22 = vpop.permute.xlu1 %158 }
  0x83   :  { %v149_v21 = vpop.permute.xlu0 %148 }
  0x86   :  { %v164_v24 = vpop.permute.xlu1 %163 }
  0x87   :  { %v154_v23 = vpop.permute.xlu0 %153 }
  0x8a   :  { %v189_v27 = vpop.permute.xlu1 %188 }
  0x8b   :  { %v187_v25 = vpop.permute.xlu0 %186 }
  0x8e   :  { %v193_v38 = vpop.permute.xlu1 %192 }
  0x8f   :  { %v191_v36 = vpop.permute.xlu0 %190 }
  0xdf   :  { %v637_v26 = vpop.f32.mrb[0].mxu0 }
  0xe0   :  { %vm167_vm2 = vcmp.ge.f32.partialorder %v637_v26, %v154_v23  ;;  %v123_v28 = vpop.f32.mrb[1].mxu0 }
  0xe1   :  { %v588_v30 = vsel %vm167_vm2, 1.0, %v723_v29  ;;  %vm166_vm4 = vcmp.ge.f32.partialorder %v123_v28, %v149_v21 }
  0xe2   :  { %v587_v31 = vsel %vm166_vm4, 1.0, %v723_v29  ;;  %v200_v34 = vsel %vm198_vm3, %v588_v30, %v189_v27 }
  0xe3   :  { %v640_v32 = vpop.f32.mrb[2].mxu0  ;;  %v199_v33 = vsel %vm198_vm3, %v587_v31, %v187_v25 }
  0xe4   :  { %vm169_vm6 = vcmp.ge.f32.partialorder %v640_v32, %v164_v24  ;;  %v133_v35 = vpop.f32.mrb[3].mxu0  ;;  %649 = vmatprep.mubr.msk.f32.mxu1 %vm203_vm5, %v199_v33 }
  0xe5   :  { %v590_v37 = vsel %vm169_vm6, 1.0, %v723_v29  ;;  %vm168_vm7 = vcmp.ge.f32.partialorder %v133_v35, %v159_v22  ;;  %650 = vmatmul.mubr.msk.f32.vlgmr.msra.gmra.mrb[0].mxu1 %vm203_vm5, %v200_v34 }
  0xe6   :  { %v589_v39 = vsel %vm168_vm7, 1.0, %v723_v29  ;;  %v202_v41 = vsel %vm198_vm3, %v590_v37, %v193_v38 }
  0xe7   :  { %v201_v40 = vsel %vm198_vm3, %v589_v39, %v191_v36 }
  0xe8   :  { %652 = vmatprep.mubr.msk.f32.mxu1 %vm203_vm5, %v201_v40 }
  0xe9   :  { %653 = vmatmul.mubr.msk.f32.gmra.mrb[2].mxu1 %vm203_vm5, %v202_v41 }
  0xea   :  { %673 = vmatprep.mubr.msk.f32.mxu1 %vm725_vm8, %v723_v29 }
 0x1b8   :  { %v651_v42 = vpop.f32.mrb[0].mxu1 }
 0x1b9   :  { %v282_v43 = vpop.f32.mrb[1].mxu1 }
 0x1ba   :  { %659 = vmatprep.mubr.msk.f32.mxu0 %vm38_vm0, %v282_v43 }
 0x1bb   :  { %660 = vmatmul.mubr.msk.f32.vlgmr.msra.gmra.mrb[4].mxu0 %vm38_vm0, %v651_v42 }
 0x1bc   :  { %v654_v44 = vpop.f32.mrb[2].mxu1 }
 0x1bd   :  { %v292_v45 = vpop.f32.mrb[3].mxu1 }
 0x1be   :  { %662 = vmatprep.mubr.msk.f32.mxu0 %vm38_vm0, %v292_v45 }
 0x1bf   :  { %663 = vmatmul.mubr.msk.f32.gmra.mrb[6].mxu0 %vm38_vm0, %v654_v44 }
 0x28e   :  { %v661_v48 = vpop.f32.mrb[4].mxu0 }
 0x28f   :  { %v394_v49 = vadd.f32 %v661_v48, %v595_v47  ;;  %v388_v50 = vpop.f32.mrb[5].mxu0 }
 0x290   :  { %v389_v51 = vadd.f32 %v595_v47, %v388_v50 }
 0x291   :  { %v408_v52 = vmax.f32 %v394_v49, 0.0 }
 0x292   :  { %v407_v53 = vmax.f32 %v389_v51, 0.0  ;;  %v664_v54 = vpop.f32.mrb[6].mxu0 }
 0x293   :  { %v404_v55 = vadd.f32 %v664_v54, %v595_v47  ;;  %v398_v56 = vpop.f32.mrb[7].mxu0 }
 0x294   :  { %v702_v57 = vpack.c.bf16 %v408_v52, %v407_v53  ;;  %v399_v58 = vadd.f32 %v595_v47, %v398_v56 }
 0x295   :  { %v410_v59 = vmax.f32 %v404_v55, 0.0 }
 0x296   :  { %v409_v60 = vmax.f32 %v399_v58, 0.0  ;;  %703 = vmatpush3.bf16.msra.mxu1 %v702_v57 }
 0x297   :  { %704 = vmatprep.subr.bf16.mxu1 %v724_v46 }
 0x298   :  { %v705_v63 = vpack.c.bf16 %v410_v59, %v409_v60 }
 0x29a   :  { %706 = vmatpush3.bf16.msra.mxu1 %v705_v63 }
 0x29b   :  { %707 = vmatprep.subr.bf16.mxu1 %v724_v46 }
 0x29d   :  { %674 = vmatmul.mubr.msk.f32.vlgmr.msra.gmra.mrb[4].mxu1 %vm203_vm5, %v411_v0 }
 0x29e   :  { %709 = vmatpush3.bf16.msra.mxu1 %v708_v1  ;;  %680 = vmatprep.mubr.msk.f32.mxu1 %vm725_vm8, %v723_v29 }
 0x370   :  { %v481_v2 = vpop.f32.mrb[4].mxu1 }
 0x371   :  { %v675_v3 = vpop.f32.mrb[5].mxu1  ;;  %681 = vmatmul.mubr.msk.f32.vlgmr.msra.gmra.mrb[6].mxu1 %vm38_vm0, %v481_v2 }
 0x444   :  { %v563_v5 = vpop.f32.mrb[6].mxu1 }
 0x445   :  { %v564_v6 = vadd.f32 %v601_v4, %v563_v5  ;;  %v682_v7 = vpop.f32.mrb[7].mxu1 }
 0x447   :  { %567 = vmax.xlane.f32.xlu0 %v564_v6 }
 0x4d4   :  { %v568_v8 = vpop.xlane.xlu0 %567 }
 0x4d5   :  { %v569_v9 = vsub.f32 %v564_v6, %v568_v8 }
 0x4d7   :  { %v570_v10 = vmul.f32 1.442695, %v569_v9 }
 0x4d9   :  { %717 = vpow2.f32 %v570_v10 }
 0x4e3   :  { %v718_v11 = vpop.eup %717 }
 0x4e4   :  { %572 = vadd.xlane.f32.xlu1 %v718_v11 }
 0x571   :  { %v573_v12 = vpop.xlane.xlu1 %572 }
 0x572   :  { %719 = vrcp.f32 %v573_v12 }
 0x57c   :  { %v720_v13 = vpop.eup %719 }
 0x57d   :  { %v575_v14 = vmul.f32 %v720_v13, %v718_v11 }
 0x57f   :  { %576 = vst [vmem:[%s873_s9] sm:$0xff] %v575_v14 }

</bundles_post_ra>
